<compile_context>
chip_gen: v7x
topology: tpu7x:2x2x1
jax: 0.10.0
libtpu: 0.0.40
codegen_flags: <defaults>
</compile_context>

<pallas_src>
import jax
import jax.numpy as jnp
from jax.experimental import pallas as pl
from jax.experimental.pallas import tpu as pltpu


def _discriminator_kernel(x_ref, w1_ref, b1_ref, w2_ref, b2_ref, o_ref):
    # ---- hidden layer: cast streamed f32 x tile to bf16 right before the MXU
    # matmul; accumulate in f32 via preferred_element_type ---------------------
    x = x_ref[...].astype(jnp.bfloat16)                                   # (TM, 784)
    h = jnp.dot(x, w1_ref[...], preferred_element_type=jnp.float32)       # (TM, 128)
    h = jnp.maximum(h + b1_ref[...], 0.0)                                 # bias + ReLU (VPU)

    # ---- output layer (128 -> 1): VPU multiply + lane reduction (no N=1 MXU
    # matmul); b2 is a scalar read from SMEM -----------------------------------
    z = jnp.sum(h * w2_ref[...], axis=-1) + b2_ref[0, 0]                  # (TM,)

    # ---- relayout to lane-dense (1, 1, TM) BEFORE the EUP ops so exp and the
    # reciprocal issue on dense vregs and the store is a single unmasked vst ---
    z = z[None, None, :]                                                  # (1, 1, TM)
    prob = pl.reciprocal(1.0 + jnp.exp(-z), approx=False)                 # exact: p in [0, 1]
    o_ref[...] = prob.astype(o_ref.dtype)


def discriminator_forward(x, w1, b1, w2, b2, *, tm=None):
    """Fused Discriminator forward pass.

    x : (B, 784) float32  (streamed f32; cast to bf16 inside the kernel)
    w1: (784, 128)  == PyTorch Linear(784,128).weight.T
    b1: (1, 128)
    w2: (1, 128)    == PyTorch Linear(128,1).weight
    b2: (1, 1)
    Returns (B, 1) float32 probabilities.
    """
    B, K = x.shape
    assert K == 784 and w1.shape == (784, 128) and b1.shape == (1, 128)
    assert w2.shape == (1, 128) and b2.shape == (1, 1)

    if tm is None:
        # Target TM=1024 (f32 x tile ~3 MiB, 2x buffered ~6 MiB: fits v5e's
        # 16 MiB default scoped VMEM; comfortable on v6e/v7x), but guarantee
        # >= 2 grid tiles whenever B allows it so the parallel grid axis can
        # shard across both TensorCores on v7x.
        half = pl.cdiv(B, 2)
        if half >= 128:
            tm = min(1024, 128 * pl.cdiv(half, 128))   # lane-dense output tiles
        else:
            tm = 8 * pl.cdiv(max(half, 1), 8)          # tiny batches: sublane-aligned
    assert tm % 8 == 0 or tm == B
    n_tiles = pl.cdiv(B, tm)

    # w1 is tiny (784x128): keep a bf16 copy so the VMEM-resident block is
    # half-size and there is no per-step weight cast. (In a training loop this
    # bf16 copy would be kept persistent rather than re-cast every call.)
    w1_bf16 = w1.astype(jnp.bfloat16)

    cost = pl.CostEstimate(
        flops=2 * B * 784 * 128 + 2 * B * 128,
        transcendentals=2 * B,
        bytes_accessed=B * 784 * 4 + 784 * 128 * 2 + 2 * 128 * 4 + 4 + n_tiles * tm * 4,
    )

    out = pl.pallas_call(
        _discriminator_kernel,
        out_shape=jax.ShapeDtypeStruct((n_tiles, 1, tm), jnp.float32),
        grid=(n_tiles,),
        in_specs=[
            pl.BlockSpec((tm, 784), lambda i: (i, 0)),          # x tile (streamed f32)
            pl.BlockSpec((784, 128), lambda i: (0, 0)),         # w1 bf16 (resident)
            pl.BlockSpec((1, 128), lambda i: (0, 0)),           # b1 (resident)
            pl.BlockSpec((1, 128), lambda i: (0, 0)),           # w2 row (resident)
            pl.BlockSpec(memory_space=pltpu.MemorySpace.SMEM),  # b2 scalar
        ],
        out_specs=pl.BlockSpec((1, 1, tm), lambda i: (i, 0, 0)),
        compiler_params=pltpu.CompilerParams(
            dimension_semantics=("parallel",),
        ),
        cost_estimate=cost,
    )(x, w1_bf16, b1, w2, b2)

    # (n_tiles, 1, TM) -> (n_tiles*TM, 1) -> drop rows past B (garbage from any
    # partial last block; never reduced over, only sliced off here).
    return out.reshape(n_tiles * tm, 1)[:B]


def init_params(key):
    """PyTorch-style uniform(-1/sqrt(fan_in), 1/sqrt(fan_in)) init."""
    k1, k2, k3, k4 = jax.random.split(key, 4)
    lim1 = 1.0 / (784.0 ** 0.5)
    lim2 = 1.0 / (128.0 ** 0.5)
    w1 = jax.random.uniform(k1, (784, 128), jnp.float32, -lim1, lim1)  # W1.T
    b1 = jax.random.uniform(k2, (1, 128), jnp.float32, -lim1, lim1)
    w2 = jax.random.uniform(k3, (1, 128), jnp.float32, -lim2, lim2)    # W2
    b2 = jax.random.uniform(k4, (1, 1), jnp.float32, -lim2, lim2)
    return w1, b1, w2, b2


if __name__ == "__main__":
    key = jax.random.PRNGKey(0)
    kx, kp = jax.random.split(key)

    B = 8
    x = jax.random.normal(kx, (B, 784), jnp.float32)
    w1, b1, w2, b2 = init_params(kp)

    out = jax.block_until_ready(discriminator_forward(x, w1, b1, w2, b2))

    # Pure-JAX f32 reference (kernel uses bf16 matmul inputs -> loose tolerance).
    ref = jax.nn.sigmoid(jnp.maximum(x @ w1 + b1, 0.0) @ w2.T + b2)
    assert out.shape == (B, 1)
    err = float(jnp.max(jnp.abs(out - ref)))
    assert jnp.allclose(out, ref, atol=2e-2, rtol=2e-2), err

    print("KERNEL_OK")
</pallas_src>

<mosaic_0001>
module attributes {stable_mosaic.version = 11 : i64} {
  func.func @_discriminator_kernel(%arg0: i32, %arg1: memref<8x784xf32, #tpu.memory_space<vmem>>, %arg2: memref<784x128xbf16, #tpu.memory_space<vmem>>, %arg3: memref<1x128xf32, #tpu.memory_space<vmem>>, %arg4: memref<1x128xf32, #tpu.memory_space<vmem>>, %arg5: memref<1x1xf32, #tpu.memory_space<smem>>, %arg6: memref<1x1x8xf32, #tpu.memory_space<vmem>>) attributes {dimension_semantics = [#tpu.dimension_semantics<parallel>], iteration_bounds = array<i64: 1>, scalar_prefetch = 0 : i64, scratch_operands = 0 : i64, tpu.core_type = #tpu.core_type<tc>, window_params = [{transform_indices = @transform_0, window_bounds = array<i64: 8, 784>}, {pipeline_mode = #tpu.pipeline_mode<synchronous>, transform_indices = @transform_1, window_bounds = array<i64: 784, 128>}, {pipeline_mode = #tpu.pipeline_mode<synchronous>, transform_indices = @transform_2, window_bounds = array<i64: 1, 128>}, {pipeline_mode = #tpu.pipeline_mode<synchronous>, transform_indices = @transform_3, window_bounds = array<i64: 1, 128>}, {transform_indices = @transform_4, window_bounds = array<i64: 1, 1>}, {transform_indices = @transform_5, window_bounds = array<i64: 1, 1, 8>}]} {
    %c0 = arith.constant 0 : index
    %c0_0 = arith.constant 0 : index
    %0 = vector.load %arg1[%c0, %c0_0] : memref<8x784xf32, #tpu.memory_space<vmem>>, vector<8x784xf32>
    %1 = arith.truncf %0 : vector<8x784xf32> to vector<8x784xbf16>
    %c0_1 = arith.constant 0 : index
    %c0_2 = arith.constant 0 : index
    %2 = vector.load %arg2[%c0_1, %c0_2] : memref<784x128xbf16, #tpu.memory_space<vmem>>, vector<784x128xbf16>
    %cst = arith.constant dense<0.000000e+00> : vector<8x128xf32>
    %3 = tpu.matmul %1, %2, %cst {dimension_numbers = #tpu.dot_dimension_numbers<[1], [0], [0], [1], [0, 0, 1, 1], [], []>} : vector<8x784xbf16>, vector<784x128xbf16>, vector<8x128xf32> -> vector<8x128xf32>
    %c0_3 = arith.constant 0 : index
    %c0_4 = arith.constant 0 : index
    %4 = vector.load %arg3[%c0_3, %c0_4] : memref<1x128xf32, #tpu.memory_space<vmem>>, vector<1x128xf32>
    %5 = vector.broadcast %4 : vector<1x128xf32> to vector<8x128xf32>
    %6 = arith.addf %3, %5 : vector<8x128xf32>
    %cst_5 = arith.constant 0.000000e+00 : f32
    %7 = vector.broadcast %cst_5 : f32 to vector<8x128xf32>
    %8 = arith.maximumf %6, %7 : vector<8x128xf32>
    %c0_6 = arith.constant 0 : index
    %c0_7 = arith.constant 0 : index
    %9 = vector.load %arg4[%c0_6, %c0_7] : memref<1x128xf32, #tpu.memory_space<vmem>>, vector<1x128xf32>
    %10 = vector.broadcast %9 : vector<1x128xf32> to vector<8x128xf32>
    %11 = arith.mulf %8, %10 : vector<8x128xf32>
    %cst_8 = arith.constant dense<0.000000e+00> : vector<8xf32>
    %12 = vector.multi_reduction <add>, %11, %cst_8 [1] : vector<8x128xf32> to vector<8xf32>
    %c0_9 = arith.constant 0 : index
    %c0_10 = arith.constant 0 : index
    %13 = memref.load %arg5[%c0_9, %c0_10] : memref<1x1xf32, #tpu.memory_space<smem>>
    %14 = vector.broadcast %13 : f32 to vector<8xf32>
    %15 = arith.addf %12, %14 : vector<8xf32>
    %16 = vector.shape_cast %15 : vector<8xf32> to vector<1x1x8xf32>
    %cst_11 = arith.constant 0.000000e+00 : f32
    %17 = vector.broadcast %cst_11 : f32 to vector<1x1x8xf32>
    %18 = arith.subf %17, %16 : vector<1x1x8xf32>
    %19 = math.exp %18 : vector<1x1x8xf32>
    %cst_12 = arith.constant 1.000000e+00 : f32
    %20 = vector.broadcast %cst_12 : f32 to vector<1x1x8xf32>
    %21 = arith.addf %20, %19 : vector<1x1x8xf32>
    %22 = tpu.reciprocal %21 : vector<1x1x8xf32> -> vector<1x1x8xf32>
    %c0_13 = arith.constant 0 : index
    %c0_14 = arith.constant 0 : index
    %c0_15 = arith.constant 0 : index
    %23 = vector.load %arg6[%c0_13, %c0_14, %c0_15] : memref<1x1x8xf32, #tpu.memory_space<vmem>>, vector<1x1x8xf32>
    tpu.vector_store %arg6[%c0_13, %c0_14, %c0_15], %22 {strides = array<i32>} : memref<1x1x8xf32, #tpu.memory_space<vmem>>, vector<1x1x8xf32>,
    return
  }
  func.func @transform_0(%arg0: i32) -> (i32, i32) {
    %c0_i32 = arith.constant 0 : i32
    %c0_i32_0 = arith.constant 0 : i32
    return %arg0, %c0_i32 : i32, i32
  }
  func.func @transform_1(%arg0: i32) -> (i32, i32) {
    %c0_i32 = arith.constant 0 : i32
    %c0_i32_0 = arith.constant 0 : i32
    %c0_i32_1 = arith.constant 0 : i32
    return %c0_i32, %c0_i32_0 : i32, i32
  }
  func.func @transform_2(%arg0: i32) -> (i32, i32) {
    %c0_i32 = arith.constant 0 : i32
    %c0_i32_0 = arith.constant 0 : i32
    %c0_i32_1 = arith.constant 0 : i32
    return %c0_i32, %c0_i32_0 : i32, i32
  }
  func.func @transform_3(%arg0: i32) -> (i32, i32) {
    %c0_i32 = arith.constant 0 : i32
    %c0_i32_0 = arith.constant 0 : i32
    %c0_i32_1 = arith.constant 0 : i32
    return %c0_i32, %c0_i32_0 : i32, i32
  }
  func.func @transform_4(%arg0: i32) -> (i32, i32) {
    %c0_i32 = arith.constant 0 : i32
    %c0_i32_0 = arith.constant 0 : i32
    %c0_i32_1 = arith.constant 0 : i32
    return %c0_i32, %c0_i32_0 : i32, i32
  }
  func.func @transform_5(%arg0: i32) -> (i32, i32, i32) {
    %c0_i32 = arith.constant 0 : i32
    %c0_i32_0 = arith.constant 0 : i32
    %c0_i32_1 = arith.constant 0 : i32
    return %arg0, %c0_i32, %c0_i32_0 : i32, i32, i32
  }
}

</mosaic_0001>

<bundles_post_ra>
// kernel: tpu_custom_call.1
= control target key start
LH: loop header
LB: loop body
LE: loop exit
PB: predicated region body
PF: predicated region fallthrough
CT: control target
= control target key end

     0   :  { %11 = vsyncpa [#allocation4], 0  ;;  %s1018_s0 = inlined_call_operand.hbm [shape: f32[8,784], index: 0, kind: input, shape index: {}]   ;;  %s1019_s1 = inlined_call_operand.hbm [shape: bf16[784,128], index: 1, kind: input, shape index: {}]   ;;  %s1020_s2 = inlined_call_operand.vmem [shape: f32[1,128], index: 2, kind: input, shape index: {}]   ;;  %s1021_s3 = inlined_call_operand.vmem [shape: f32[1,128], index: 3, kind: input, shape index: {}]   ;;  %s1022_s4 = inlined_call_operand.<no memory space> [shape: f32[1,1], index: 4, kind: input, shape index: {}]   ;;  %s1023_s5 = inlined_call_operand.hbm [shape: f32[1,1,8], index: 5, kind: output, shape index: {}]  }
   0x1   :  { %12 = vsyncpa [#allocation7], 0 }
   0x2   :  { %13 = vsyncpa [#allocation5], 0  ;;  %s929_s18 = smov [#allocation3]   ;;  %s930_s20 = smov [#allocation6]  }
   0x3   :  { %s20_s19 = sshll.u32 %s929_s18, 4  ;;  %s29_s21 = sshll.u32 %s930_s20, 4  ;;  %s21_s19 = int_to_ptr.vmem [resolvable:$true] %s20_s19  ;;  %s966_s21 = int_to_ptr.vmem [resolvable:$true] %s29_s21 }
   0x4   :  { %s857_s24 = scalar_lea.hbm %s1018_s0, 896 }
   0x5   :  { %p858_p0 = scmp.ne.s32.totalorder %s1018_s0, %s857_s24  ;;  %p861_p1 = scmp.lt.u32.totalorder %s857_s24, %s1018_s0 }
   0x7   :  { %p863_p2 = pnand %p861_p1, %p858_p0 }
   0x9   :  { %866 = shalt.err (!%p863_p2)
}
   0xa   :  { %s867_s29 = scalar_lea.vmem %s21_s19, 896  ;;  %p872_p4 = scmp.lt.s32.totalorder %s21_s19, %s21_s19 }
   0xb   :  { %p868_p3 = scmp.ne.s32.totalorder %s21_s19, %s867_s29  ;;  %p873_p5 = scmp.lt.s32.totalorder %s867_s29, %s867_s29 }
   0xd   :  { %p874_p6 = por %p873_p5, %p872_p4 }
   0xf   :  { %p875_p7 = pnand %p874_p6, %p868_p3 }
  0x11   :  { %878 = shalt.err (!%p875_p7)
}
  0x12   :  { %23 = dma.hbm_to_vmem [thread:$0]  %s1018_s0, 896, %s21_s19, [#allocation4]  }
  0x13   :  { %s879_s9 = scalar_lea.hbm %s1019_s1, 6272 }
  0x14   :  { %p880_p8 = scmp.ne.s32.totalorder %s1019_s1, %s879_s9  ;;  %p883_p9 = scmp.lt.u32.totalorder %s879_s9, %s1019_s1 }
  0x16   :  { %p885_p10 = pnand %p883_p9, %p880_p8 }
  0x18   :  { %888 = shalt.err (!%p885_p10)
}
  0x19   :  { %s889_s14 = scalar_lea.vmem %s966_s21, 6272  ;;  %p894_p12 = scmp.lt.s32.totalorder %s966_s21, %s966_s21 }
  0x1a   :  { %p890_p11 = scmp.ne.s32.totalorder %s966_s21, %s889_s14  ;;  %p895_p13 = scmp.lt.s32.totalorder %s889_s14, %s889_s14 }
  0x1c   :  { %p896_p0 = por %p895_p13, %p894_p12 }
  0x1e   :  { %p897_p1 = pnand %p896_p0, %p890_p11 }
  0x20   :  { %900 = shalt.err (!%p897_p1)
}
  0x21   :  { %s931_s0 = smov 64   ;;  %s932_s15 = smov 4  }
  0x22   :  { %35 = dma.hbm_to_vmem [thread:$0]  %s1019_s1, 6272, %s966_s21, [#allocation7], %s931_s0, %s931_s0, %s932_s15  }
  0x23   :  { %923 = dma.done.wait [#allocation4], 896  }
  0x24   :  { %924 = vsyncadd [#allocation4], 4294966400 }
  0x25   :  { %925 = dma.done.wait [#allocation7], 6272  }
  0x26   :  { %926 = vsyncadd [#allocation7], 4294961024  ;;  %v804_v0 = vld [vmem:[#allocation6 + $0x40] sm:$0xff]   ;;  %v808_v4 = vld [vmem:[#allocation6 + $0x48] sm:$0xff]   ;;  %v933_v44 = vmov 0.0   ;;  %vm934_vm0 = vmmov 0  }
  0x27   :  { %v805_v1 = vld [vmem:[#allocation6] sm:$0xff]   ;;  %723 = vmatprep.subr.bf16.mxu0 %v804_v0  ;;  %v809_v5 = vld [vmem:[#allocation6 + $0x8] sm:$0xff]   ;;  %v812_v8 = vld [vmem:[#allocation6 + $0x50] sm:$0xff]   ;;  %vm462_vm1 = vcmask 130048   ;;  %vm653_vm2 = vcmask 57344  }
  0x28   :  { %v806_v2 = vld [vmem:[#allocation6 + $0xc0] sm:$0xff]   ;;  %724 = vmatpush3.bf16.msra.mxu0 %v805_v1  ;;  %v810_v6 = vld [vmem:[#allocation6 + $0xc8] sm:$0xff]   ;;  %v813_v9 = vld [vmem:[#allocation6 + $0x10] sm:$0xff]  }
  0x29   :  { %v807_v3 = vld [vmem:[#allocation6 + $0x80] sm:$0xff]   ;;  %745 = vmatprep.subr.bf16.mxu1 %v806_v2  ;;  %725 = vmatprep.subr.bf16.mxu0 %v808_v4  ;;  %v811_v7 = vld [vmem:[#allocation6 + $0x88] sm:$0xff]   ;;  %v814_v10 = vld [vmem:[#allocation6 + $0xd0] sm:$0xff]  }
  0x2a   :  { %746 = vmatpush3.bf16.msra.mxu1 %v807_v3  ;;  %v815_v11 = vld [vmem:[#allocation6 + $0x90] sm:$0xff]   ;;  %v816_v12 = vld [vmem:[#allocation6 + $0x58] sm:$0xff]   ;;  %v820_v16 = vld [vmem:[#allocation6 + $0x60] sm:$0xff]  }
  0x2b   :  { %747 = vmatprep.subr.bf16.mxu1 %v810_v6  ;;  %v817_v13 = vld [vmem:[#allocation6 + $0x18] sm:$0xff]   ;;  %v821_v17 = vld [vmem:[#allocation6 + $0x20] sm:$0xff]   ;;  %v824_v20 = vld [vmem:[#allocation6 + $0x68] sm:$0xff]  }
  0x2c   :  { %726 = vmatpush3.bf16.msra.mxu0 %v809_v5  ;;  %v818_v14 = vld [vmem:[#allocation6 + $0xd8] sm:$0xff]   ;;  %v822_v18 = vld [vmem:[#allocation6 + $0xe0] sm:$0xff]   ;;  %v825_v21 = vld [vmem:[#allocation6 + $0x28] sm:$0xff]  }
  0x2d   :  { %727 = vmatprep.subr.bf16.mxu0 %v812_v8  ;;  %v819_v15 = vld [vmem:[#allocation6 + $0x98] sm:$0xff]   ;;  %v823_v19 = vld [vmem:[#allocation6 + $0xa0] sm:$0xff]   ;;  %v826_v22 = vld [vmem:[#allocation6 + $0xe8] sm:$0xff]  }
  0x2e   :  { %748 = vmatpush3.bf16.msra.mxu1 %v811_v7  ;;  %v827_v23 = vld [vmem:[#allocation6 + $0xa8] sm:$0xff]   ;;  %v828_v24 = vld [vmem:[#allocation6 + $0x70] sm:$0xff]   ;;  %v832_v28 = vld [vmem:[#allocation6 + $0x78] sm:$0xff]  }
  0x2f   :  { %749 = vmatprep.subr.bf16.mxu1 %v814_v10  ;;  %v829_v25 = vld [vmem:[#allocation6 + $0x30] sm:$0xff]   ;;  %v833_v29 = vld [vmem:[#allocation6 + $0x38] sm:$0xff]   ;;  %v49_v34 = vld [vmem:[#allocation3] sm:$0xff] }
  0x30   :  { %728 = vmatpush3.bf16.msra.mxu0 %v813_v9  ;;  %v830_v26 = vld [vmem:[#allocation6 + $0xf0] sm:$0xff]   ;;  %v834_v30 = vld [vmem:[#allocation6 + $0xf8] sm:$0xff]   ;;  %v56_v35 = vpack.c.bf16 %v49_v34, %v49_v34  ;;  %v836_v36 = vld [vmem:[#allocation6 + $0x140] sm:$0xff]   ;;  %v646_v34 = vlaneseq }
  0x31   :  { %729 = vmatprep.subr.bf16.mxu0 %v816_v12  ;;  %v831_v27 = vld [vmem:[#allocation6 + $0xb0] sm:$0xff]   ;;  %v835_v33 = vld [vmem:[#allocation6 + $0xb8] sm:$0xff]   ;;  %v52_v37 = vld [vmem:[#allocation3 + $0x18] sm:$0xff] }
  0x32   :  { %750 = vmatpush3.bf16.msra.mxu1 %v815_v11  ;;  %v50_v31 = vld [vmem:[#allocation3 + $0x8] sm:$0xff]  ;;  %v59_v38 = vpack.c.bf16 %v52_v37, %v52_v37  ;;  %v837_v39 = vld [vmem:[#allocation6 + $0x100] sm:$0xff]   ;;  %v51_v40 = vld [vmem:[#allocation3 + $0x10] sm:$0xff] }
  0x33   :  { %751 = vmatprep.subr.bf16.mxu1 %v818_v14  ;;  %v57_v32 = vpack.c.bf16 %v50_v31, %v50_v31  ;;  %v58_v41 = vpack.c.bf16 %v51_v40, %v51_v40  ;;  %v838_v42 = vld [vmem:[#allocation6 + $0x148] sm:$0xff]   ;;  %v840_v45 = vld [vmem:[#allocation6 + $0x150] sm:$0xff]   ;;  %v842_v47 = vld [vmem:[#allocation6 + $0x158] sm:$0xff]  }
  0x34   :  { %730 = vmatpush3.bf16.msra.mxu0 %v817_v13  ;;  %538 = vmatprep.mubr.bf16.mxu1 %v59_v38  ;;  %v839_v43 = vld [vmem:[#allocation6 + $0x108] sm:$0xff]   ;;  %v841_v46 = vld [vmem:[#allocation6 + $0x110] sm:$0xff]   ;;  %v843_v48 = vld [vmem:[#allocation6 + $0x118] sm:$0xff]  }
  0x35   :  { %731 = vmatprep.subr.bf16.mxu0 %v820_v16  ;;  %498 = vmatprep.mubr.bf16.mxu0 %v57_v32  ;;  %v844_v49 = vld [vmem:[#allocation6 + $0x160] sm:$0xff]   ;;  %v846_v51 = vld [vmem:[#allocation6 + $0x168] sm:$0xff]   ;;  %v54_v53 = vld [vmem:[#allocation3 + $0x28] sm:$0xff] }
  0x36   :  { %752 = vmatpush3.bf16.msra.mxu1 %v819_v15  ;;  %v845_v50 = vld [vmem:[#allocation6 + $0x120] sm:$0xff]   ;;  %v61_v54 = vpack.c.bf16 %v54_v53, %v54_v53  ;;  %v55_v55 = vld [vmem:[#allocation3 + $0x30] sm:$0xff]  ;;  %v847_v56 = vld [vmem:[#allocation6 + $0x128] sm:$0xff]  }
  0x37   :  { %753 = vmatprep.subr.bf16.mxu1 %v822_v18  ;;  %v852_v52 = vld [vmem:[#allocation6 + $0x180] sm:$0xff]   ;;  %v62_v57 = vpack.c.bf16 %v55_v55, %v55_v55  ;;  %v848_v58 = vld [vmem:[#allocation6 + $0x170] sm:$0xff]   ;;  %v850_v60 = vld [vmem:[#allocation6 + $0x178] sm:$0xff]  }
  0x38   :  { %732 = vmatpush3.bf16.msra.mxu0 %v821_v17  ;;  %v849_v59 = vld [vmem:[#allocation6 + $0x130] sm:$0xff]   ;;  %v851_v61 = vld [vmem:[#allocation6 + $0x138] sm:$0xff]   ;;  %v53_v62 = vld [vmem:[#allocation3 + $0x20] sm:$0xff] }
  0x39   :  { %733 = vmatprep.subr.bf16.mxu0 %v824_v20  ;;  %v60_v63 = vpack.c.bf16 %v53_v62, %v53_v62  ;;  %v671_v1 = vld [vmem:[%s1020_s2] ss:$0 sm:$0xff] }
  0x3a   :  { %754 = vmatpush3.bf16.msra.mxu1 %v823_v19 }
  0x3b   :  { %755 = vmatprep.subr.bf16.mxu1 %v826_v22 }
  0x3c   :  { %734 = vmatpush3.bf16.msra.mxu0 %v825_v21 }
  0x3d   :  { %735 = vmatprep.subr.bf16.mxu0 %v828_v24  ;;  %v722_v24 = vld [vmem:[%s1021_s3] ss:$0 sm:$0xff]  ;;  %s935_s3 = smov [#allocation8]  }
  0x3e   :  { %756 = vmatpush3.bf16.msra.mxu1 %v827_v23  ;;  %s661_s22 = sshll.u32 %s935_s3, 4  ;;  %s662_s22 = int_to_ptr.vmem [resolvable:$true] %s661_s22 }
  0x3f   :  { %757 = vmatprep.subr.bf16.mxu1 %v830_v26  ;;  %s905_s23 = scalar_lea.vmem %s662_s22, 32  ;;  %p906_p3 = scmp.lt.s32.totalorder %s662_s22, %s662_s22 }
  0x40   :  { %736 = vmatpush3.bf16.msra.mxu0 %v829_v25 }
  0x41   :  { %737 = vmatprep.subr.bf16.mxu0 %v832_v28 }
  0x42   :  { %758 = vmatpush3.bf16.msra.mxu1 %v831_v27  ;;  %v638_v27 = vstv %s1022_s4  ;;  %s901_s4 = scalar_lea.vmem %s662_s22, 16 }
  0x43   :  { %759 = vmatprep.subr.bf16.mxu1 %v834_v30  ;;  %p902_p2 = scmp.ne.s32.totalorder %s662_s22, %s901_s4  ;;  %p907_p4 = scmp.lt.s32.totalorder %s905_s23, %s901_s4 }
  0x44   :  { %738 = vmatpush3.bf16.msra.mxu0 %v833_v29 }
  0x45   :  { %767 = vmatprep.subr.bf16.mxu0 %v836_v36  ;;  %v649_v36 = vshrl.u32 %v646_v34, 7  ;;  %p908_p5 = por %p907_p4, %p906_p3 }
  0x46   :  { %760 = vmatpush3.bf16.msra.mxu1 %v835_v33 }
  0x47   :  { %499 = vmatmul.mubr.bf16.vlgmr.msra.gmra.mrb[0].mxu0 %v56_v35  ;;  %791 = vmatprep.subr.bf16.mxu1 %v933_v44  ;;  %v647_v35 = vand.u32 127, %v646_v34  ;;  %p909_p6 = pnand %p908_p5, %p902_p2 }
  0x48   :  { %768 = vmatpush3.bf16.msra.mxu0 %v837_v39  ;;  %578 = vmatprep.mubr.bf16.mxu0 %v61_v54 }
  0x49   :  { %539 = vmatmul.mubr.bf16.vlgmr.msra.gmra.mrb[0].mxu1 %v58_v41  ;;  %769 = vmatprep.subr.bf16.mxu0 %v838_v42  ;;  %v650_v37 = vsub.s32 %v647_v35, %v649_v36 }
  0x4a   :  { %793 = vmatprep.mubr.msk.bf16.mxu1 %vm934_vm0, %v933_v44  ;;  %792 = vmatpush3.bf16.msra.mxu1 %v852_v52 }
  0x4c   :  { %770 = vmatpush3.bf16.msra.mxu0 %v839_v43 }
  0x4d   :  { %771 = vmatprep.subr.bf16.mxu0 %v840_v45 }
  0x50   :  { %772 = vmatpush3.bf16.msra.mxu0 %v841_v46 }
  0x51   :  { %773 = vmatprep.subr.bf16.mxu0 %v842_v47  ;;  %794 = vmatmul.mubr.msk.bf16.vlgmr.msra.gmra.mrb[4].mxu1 %vm462_vm1, %v62_v57 }
  0x54   :  { %774 = vmatpush3.bf16.msra.mxu0 %v843_v48 }
  0x55   :  { %775 = vmatprep.subr.bf16.mxu0 %v844_v49 }
  0x58   :  { %776 = vmatpush3.bf16.msra.mxu0 %v845_v50 }
  0x59   :  { %777 = vmatprep.subr.bf16.mxu0 %v846_v51 }
  0x5c   :  { %778 = vmatpush3.bf16.msra.mxu0 %v847_v56 }
  0x5d   :  { %779 = vmatprep.subr.bf16.mxu0 %v848_v58 }
  0x60   :  { %780 = vmatpush3.bf16.msra.mxu0 %v849_v59 }
  0x61   :  { %781 = vmatprep.subr.bf16.mxu0 %v850_v60 }
  0x64   :  { %782 = vmatpush3.bf16.msra.mxu0 %v851_v61 }
  0x67   :  { %579 = vmatmul.mubr.bf16.vlgmr.msra.gmra.mrb[4].mxu0 %v60_v63 }
 0x11a   :  { %v739_v0 = vpop.f32.mrb[0].mxu0 }
 0x11b   :  { %v740_v2 = vpop.f32.mrb[1].mxu0 }
 0x11c   :  { %v741_v3 = vadd.f32 %v740_v2, %v739_v0  ;;  %v742_v4 = vpop.f32.mrb[2].mxu0  ;;  %v761_v5 = vpop.f32.mrb[0].mxu1 }
 0x11d   :  { %v743_v6 = vpop.f32.mrb[3].mxu0  ;;  %v762_v8 = vpop.f32.mrb[1].mxu1 }
 0x11e   :  { %v501_v7 = vadd.f32 %v741_v3, %v671_v1  ;;  %v763_v9 = vadd.f32 %v762_v8, %v761_v5  ;;  %v764_v10 = vpop.f32.mrb[2].mxu1 }
 0x11f   :  { %v765_v11 = vpop.f32.mrb[3].mxu1 }
 0x120   :  { %v541_v12 = vadd.f32 %v763_v9, %v501_v7 }
 0x124   :  { %v620_v13 = vpop.f32.mrb[4].mxu1 }
 0x125   :  { %v795_v14 = vpop.f32.mrb[5].mxu1 }
 0x126   :  { %v623_v15 = vpop.f32.mrb[6].mxu1 }
 0x127   :  { %v796_v16 = vpop.f32.mrb[7].mxu1 }
 0x13a   :  { %v783_v17 = vpop.f32.mrb[4].mxu0 }
 0x13b   :  { %v784_v18 = vpop.f32.mrb[5].mxu0 }
 0x13c   :  { %v785_v19 = vadd.f32 %v784_v18, %v783_v17  ;;  %v786_v20 = vpop.f32.mrb[6].mxu0 }
 0x13d   :  { %v787_v21 = vpop.f32.mrb[7].mxu0 }
 0x13e   :  { %v581_v22 = vadd.f32 %v785_v19, %v541_v12 }
 0x140   :  { %v621_v23 = vadd.f32 %v620_v13, %v581_v22 }
 0x142   :  { %v626_v25 = vmax.f32 %v621_v23, 0.0 }
 0x144   :  { %v634_v26 = vmul.f32 %v722_v24, %v626_v25 }
 0x146   :  { %635 = vadd.xlane.f32.xlu0 %v634_v26 }
 0x1d3   :  { %v636_v28 = vpop.xlane.xlu0 %635 }
 0x1d4   :  { %v639_v29 = vadd.f32 %v638_v27, %v636_v28 }
 0x1d6   :  { %v640_v30 = vsub.f32 0.0, %v639_v29 }
 0x1d8   :  { %v641_v31 = vmul.f32 1.442695, %v640_v30 }
 0x1da   :  { %853 = vpow2.f32 %v641_v31 }
 0x1e4   :  { %v854_v32 = vpop.eup %853 }
 0x1e5   :  { %v643_v33 = vadd.f32 1.0, %v854_v32 }
 0x1e7   :  { %855 = vrcp.f32 %v643_v33 }
 0x1f1   :  { %v856_v38 = vpop.eup %855 }
 0x1f2   :  { %v651_v39 = vrot.slane %v856_v38, %v650_v37 }
 0x1f4   :  { %654 = vst.msk [vmem:[#allocation8] sm:$0x1] %vm653_vm2, %v651_v39 }
 0x1f5   :  { %912 = shalt.err (!%p909_p6)
}
 0x1f6   :  { %s913_s26 = scalar_lea.hbm %s1023_s5, 16 }
 0x1f7   :  { %p914_p7 = scmp.ne.s32.totalorder %s1023_s5, %s913_s26  ;;  %p917_p8 = scmp.lt.u32.totalorder %s913_s26, %s1023_s5 }
 0x1f9   :  { %p919_p9 = pnand %p917_p8, %p914_p7 }
 0x1fb   :  { %922 = shalt.err (!%p919_p9)
}
 0x1fc   :  { %664 = dma.vmem_to_hbm [thread:$0]  %s662_s22, 16, %s1023_s5, [#allocation5]  }
 0x1fd   :  { %927 = dma.done.wait [#allocation5], 16  }
 0x1fe   :  { %928 = vsyncadd [#allocation5], 4294967280 }
 0x1ff   :  { %668 = vsyncpa [#allocation4], 1 }
 0x200   :  { %669 = vsyncpa [#allocation7], 1 }
 0x201   :  { %670 = vsyncpa [#allocation5], 1 }

</bundles_post_ra>
